<compile_context>
chip_gen: v7x
topology: tpu7x:2x2x1
jax: 0.10.0
libtpu: 0.0.40
codegen_flags: <defaults>
</compile_context>

<pallas_src>
import jax
import jax.numpy as jnp
from jax.experimental import pallas as pl
from jax.experimental.pallas import tpu as pltpu

_LANE = 128
_SUBLANE = 8


def _round_up(x: int, m: int) -> int:
    return ((x + m - 1) // m) * m


def _critic_kernel(xt_ref, w1_ref, b1_ref, w2_ref, b2_ref, w3_ref, b3_ref, o_ref):
    xt = xt_ref[...]                                                    # (Dp, TB)

    # Layer 1: (Hp, Dp) @ (Dp, TB) + (Hp, 1)  -> ReLU
    h1 = jnp.dot(w1_ref[...], xt, preferred_element_type=jnp.float32) + b1_ref[...]
    h1 = jnp.maximum(h1, 0.0)                                           # (Hp, TB)

    # Layer 2: (Hp, Hp) @ (Hp, TB) + (Hp, 1)  -> ReLU
    h2 = jnp.dot(w2_ref[...], h1, preferred_element_type=jnp.float32) + b2_ref[...]
    h2 = jnp.maximum(h2, 0.0)                                           # (Hp, TB)

    # Layer 3 (hidden -> 1): VPU multiply + XLU sublane reduce; scalar bias from SMEM.
    v = jnp.sum(h2 * w3_ref[...], axis=0, keepdims=True) + b3_ref[0, 0]  # (1, TB)
    o_ref[...] = v.astype(o_ref.dtype)


def init_critic_params(key, state_dim, hidden_dim):
    """Deterministic init mimicking torch.nn.Linear default (U[-1/sqrt(fan_in), ...])."""
    ks = jax.random.split(key, 6)

    def linear(kw, kb, fan_in, fan_out):
        bound = 1.0 / jnp.sqrt(float(fan_in))
        w = jax.random.uniform(kw, (fan_in, fan_out), jnp.float32, -bound, bound)
        b = jax.random.uniform(kb, (1, fan_out), jnp.float32, -bound, bound)
        return w, b

    w1, b1 = linear(ks[0], ks[1], state_dim, hidden_dim)
    w2, b2 = linear(ks[2], ks[3], hidden_dim, hidden_dim)
    w3, b3 = linear(ks[4], ks[5], hidden_dim, 1)
    return {"w1": w1, "b1": b1, "w2": w2, "b2": b2, "w3": w3, "b3": b3}


def pack_critic_params(params):
    """One-time layout change: transpose weights to (out, in), zero-pad feature dims
    to the 128-lane width, biases as (Hp, 1) columns, b3 as an SMEM scalar."""
    w1, b1 = params["w1"], params["b1"]      # (D, H), (1, H)
    w2, b2 = params["w2"], params["b2"]      # (H, H), (1, H)
    w3, b3 = params["w3"], params["b3"]      # (H, 1), (1, 1)
    D, H = w1.shape
    Dp, Hp = _round_up(D, _LANE), _round_up(H, _LANE)

    def pad2(a, rows, cols):
        return jnp.pad(a, ((0, rows - a.shape[0]), (0, cols - a.shape[1])))

    return {
        "w1": pad2(w1.T, Hp, Dp),                       # (Hp, Dp)
        "b1": pad2(b1.T, Hp, 1),                        # (Hp, 1)
        "w2": pad2(w2.T, Hp, Hp),                       # (Hp, Hp)
        "b2": pad2(b2.T, Hp, 1),                        # (Hp, 1)
        "w3": pad2(w3, Hp, 1),                          # (Hp, 1) column for VPU reduce
        "b3": b3.reshape(1, 1).astype(jnp.float32),     # scalar, lives in SMEM
    }


def critic_forward(state, packed, *, batch_tile=512):
    """state: (B, state_dim) f32.  packed: output of pack_critic_params."""
    B, D = state.shape
    w1, b1 = packed["w1"], packed["b1"]
    w2, b2 = packed["w2"], packed["b2"]
    w3, b3 = packed["w3"], packed["b3"]
    Hp, Dp = w1.shape

    # Batch tile = lane width multiple (batch lives on lanes), capped by batch_tile.
    TB = min(_round_up(batch_tile, _LANE), _round_up(max(B, 1), _LANE))
    Bp = _round_up(B, TB)
    grid = (Bp // TB,)

    # Feature-major padded input: (Dp, Bp).  Single XLA pad+transpose copy.
    xt = jnp.pad(state, ((0, Bp - B), (0, Dp - D))).T

    resident = lambda a: pl.BlockSpec(a.shape, lambda i: (0,) * a.ndim)

    flops = 2 * Bp * (Dp * Hp + Hp * Hp + Hp)
    bytes_accessed = 4 * (Bp * Dp + Dp * Hp + Hp * Hp + 3 * Hp + 1 + Bp)

    out = pl.pallas_call(
        _critic_kernel,
        out_shape=jax.ShapeDtypeStruct((Bp // TB, 1, TB), jnp.float32),
        grid=grid,
        in_specs=[
            pl.BlockSpec((Dp, TB), lambda i: (0, i)),        # streamed x^T tile
            resident(w1), resident(b1),                      # VMEM-resident weights
            resident(w2), resident(b2),
            resident(w3),
            pl.BlockSpec(memory_space=pltpu.MemorySpace.SMEM),  # scalar bias b3
        ],
        out_specs=pl.BlockSpec((None, 1, TB), lambda i: (i, 0, 0)),  # lane-dense rows
        compiler_params=pltpu.CompilerParams(
            dimension_semantics=("parallel",),
        ),
        cost_estimate=pl.CostEstimate(
            flops=flops, transcendentals=0, bytes_accessed=bytes_accessed),
    )(xt, w1, b1, w2, b2, w3, b3)

    return out.reshape(Bp)[:B].reshape(B, 1)


def critic_reference(state, p):
    h1 = jnp.maximum(state @ p["w1"] + p["b1"], 0.0)
    h2 = jnp.maximum(h1 @ p["w2"] + p["b2"], 0.0)
    return h2 @ p["w3"] + p["b3"]


if __name__ == "__main__":
    key = jax.random.PRNGKey(0)
    k_params, k_state1, k_state2 = jax.random.split(key, 3)

    batch = 8
    state_dim = 16
    hidden_dim = 32

    params = init_critic_params(k_params, state_dim, hidden_dim)
    packed = pack_critic_params(params)

    # Case 1: small batch, single grid step.
    state = jax.random.normal(k_state1, (batch, state_dim), jnp.float32)
    out = jax.block_until_ready(critic_forward(state, packed))
    ref = critic_reference(state, params)
    assert out.shape == (batch, 1), out.shape
    assert jnp.allclose(out, ref, atol=1e-4, rtol=1e-4), "mismatch vs reference (case 1)"

    # Case 2: ragged batch with multiple grid steps (exercises tiling + padding).
    batch2 = 300
    state2 = jax.random.normal(k_state2, (batch2, state_dim), jnp.float32)
    out2 = jax.block_until_ready(critic_forward(state2, packed, batch_tile=128))
    ref2 = critic_reference(state2, params)
    assert out2.shape == (batch2, 1), out2.shape
    assert jnp.allclose(out2, ref2, atol=1e-4, rtol=1e-4), "mismatch vs reference (case 2)"

    print("KERNEL_OK")
</pallas_src>

<mosaic_0001>
module attributes {stable_mosaic.version = 11 : i64} {
  func.func @_critic_kernel(%arg0: i32, %arg1: memref<128x128xf32, #tpu.memory_space<vmem>>, %arg2: memref<128x128xf32, #tpu.memory_space<vmem>>, %arg3: memref<128x1xf32, #tpu.memory_space<vmem>>, %arg4: memref<128x128xf32, #tpu.memory_space<vmem>>, %arg5: memref<128x1xf32, #tpu.memory_space<vmem>>, %arg6: memref<128x1xf32, #tpu.memory_space<vmem>>, %arg7: memref<1x1xf32, #tpu.memory_space<smem>>, %arg8: memref<1x1x128xf32, #tpu.memory_space<vmem>>) attributes {dimension_semantics = [#tpu.dimension_semantics<parallel>], iteration_bounds = array<i64: 1>, scalar_prefetch = 0 : i64, scratch_operands = 0 : i64, tpu.core_type = #tpu.core_type<tc>, window_params = [{transform_indices = @transform_0, window_bounds = array<i64: 128, 128>}, {pipeline_mode = #tpu.pipeline_mode<synchronous>, transform_indices = @transform_1, window_bounds = array<i64: 128, 128>}, {pipeline_mode = #tpu.pipeline_mode<synchronous>, transform_indices = @transform_2, window_bounds = array<i64: 128, 1>}, {pipeline_mode = #tpu.pipeline_mode<synchronous>, transform_indices = @transform_3, window_bounds = array<i64: 128, 128>}, {pipeline_mode = #tpu.pipeline_mode<synchronous>, transform_indices = @transform_4, window_bounds = array<i64: 128, 1>}, {pipeline_mode = #tpu.pipeline_mode<synchronous>, transform_indices = @transform_5, window_bounds = array<i64: 128, 1>}, {transform_indices = @transform_6, window_bounds = array<i64: 1, 1>}, {transform_indices = @transform_7, window_bounds = array<i64: 1, 1, 128>}]} {
    %c0 = arith.constant 0 : index
    %c0_0 = arith.constant 0 : index
    %0 = vector.load %arg1[%c0, %c0_0] : memref<128x128xf32, #tpu.memory_space<vmem>>, vector<128x128xf32>
    %c0_1 = arith.constant 0 : index
    %c0_2 = arith.constant 0 : index
    %1 = vector.load %arg2[%c0_1, %c0_2] : memref<128x128xf32, #tpu.memory_space<vmem>>, vector<128x128xf32>
    %cst = arith.constant dense<0.000000e+00> : vector<128x128xf32>
    %2 = tpu.matmul %1, %0, %cst {dimension_numbers = #tpu.dot_dimension_numbers<[1], [0], [0], [1], [0, 0, 1, 1], [], []>} : vector<128x128xf32>, vector<128x128xf32>, vector<128x128xf32> -> vector<128x128xf32>
    %c0_3 = arith.constant 0 : index
    %c0_4 = arith.constant 0 : index
    %3 = vector.load %arg3[%c0_3, %c0_4] : memref<128x1xf32, #tpu.memory_space<vmem>>, vector<128x1xf32>
    %4 = vector.broadcast %3 : vector<128x1xf32> to vector<128x128xf32>
    %5 = arith.addf %2, %4 : vector<128x128xf32>
    %cst_5 = arith.constant 0.000000e+00 : f32
    %6 = vector.broadcast %cst_5 : f32 to vector<128x128xf32>
    %7 = arith.maximumf %5, %6 : vector<128x128xf32>
    %c0_6 = arith.constant 0 : index
    %c0_7 = arith.constant 0 : index
    %8 = vector.load %arg4[%c0_6, %c0_7] : memref<128x128xf32, #tpu.memory_space<vmem>>, vector<128x128xf32>
    %cst_8 = arith.constant dense<0.000000e+00> : vector<128x128xf32>
    %9 = tpu.matmul %8, %7, %cst_8 {dimension_numbers = #tpu.dot_dimension_numbers<[1], [0], [0], [1], [0, 0, 1, 1], [], []>} : vector<128x128xf32>, vector<128x128xf32>, vector<128x128xf32> -> vector<128x128xf32>
    %c0_9 = arith.constant 0 : index
    %c0_10 = arith.constant 0 : index
    %10 = vector.load %arg5[%c0_9, %c0_10] : memref<128x1xf32, #tpu.memory_space<vmem>>, vector<128x1xf32>
    %11 = vector.broadcast %10 : vector<128x1xf32> to vector<128x128xf32>
    %12 = arith.addf %9, %11 : vector<128x128xf32>
    %cst_11 = arith.constant 0.000000e+00 : f32
    %13 = vector.broadcast %cst_11 : f32 to vector<128x128xf32>
    %14 = arith.maximumf %12, %13 : vector<128x128xf32>
    %c0_12 = arith.constant 0 : index
    %c0_13 = arith.constant 0 : index
    %15 = vector.load %arg6[%c0_12, %c0_13] : memref<128x1xf32, #tpu.memory_space<vmem>>, vector<128x1xf32>
    %16 = vector.broadcast %15 : vector<128x1xf32> to vector<128x128xf32>
    %17 = arith.mulf %14, %16 : vector<128x128xf32>
    %cst_14 = arith.constant dense<0.000000e+00> : vector<128xf32>
    %18 = vector.multi_reduction <add>, %17, %cst_14 [0] : vector<128x128xf32> to vector<128xf32>
    %19 = vector.shape_cast %18 : vector<128xf32> to vector<1x128xf32>
    %c0_15 = arith.constant 0 : index
    %c0_16 = arith.constant 0 : index
    %20 = memref.load %arg7[%c0_15, %c0_16] : memref<1x1xf32, #tpu.memory_space<smem>>
    %21 = vector.broadcast %20 : f32 to vector<1x128xf32>
    %22 = arith.addf %19, %21 : vector<1x128xf32>
    %c0_17 = arith.constant 0 : index
    %c0_18 = arith.constant 0 : index
    %c0_19 = arith.constant 0 : index
    %23 = vector.load %arg8[%c0_17, %c0_18, %c0_19] : memref<1x1x128xf32, #tpu.memory_space<vmem>>, vector<1x1x128xf32>
    %24 = vector.shape_cast %23 : vector<1x1x128xf32> to vector<1x128xf32>
    %25 = vector.shape_cast %22 : vector<1x128xf32> to vector<1x1x128xf32>
    tpu.vector_store %arg8[%c0_17, %c0_18, %c0_19], %25 {strides = array<i32>} : memref<1x1x128xf32, #tpu.memory_space<vmem>>, vector<1x1x128xf32>,
    return
  }
  func.func @transform_0(%arg0: i32) -> (i32, i32) {
    %c0_i32 = arith.constant 0 : i32
    %c0_i32_0 = arith.constant 0 : i32
    return %c0_i32, %arg0 : i32, i32
  }
  func.func @transform_1(%arg0: i32) -> (i32, i32) {
    %c0_i32 = arith.constant 0 : i32
    %c0_i32_0 = arith.constant 0 : i32
    %c0_i32_1 = arith.constant 0 : i32
    return %c0_i32, %c0_i32_0 : i32, i32
  }
  func.func @transform_2(%arg0: i32) -> (i32, i32) {
    %c0_i32 = arith.constant 0 : i32
    %c0_i32_0 = arith.constant 0 : i32
    %c0_i32_1 = arith.constant 0 : i32
    return %c0_i32, %c0_i32_0 : i32, i32
  }
  func.func @transform_3(%arg0: i32) -> (i32, i32) {
    %c0_i32 = arith.constant 0 : i32
    %c0_i32_0 = arith.constant 0 : i32
    %c0_i32_1 = arith.constant 0 : i32
    return %c0_i32, %c0_i32_0 : i32, i32
  }
  func.func @transform_4(%arg0: i32) -> (i32, i32) {
    %c0_i32 = arith.constant 0 : i32
    %c0_i32_0 = arith.constant 0 : i32
    %c0_i32_1 = arith.constant 0 : i32
    return %c0_i32, %c0_i32_0 : i32, i32
  }
  func.func @transform_5(%arg0: i32) -> (i32, i32) {
    %c0_i32 = arith.constant 0 : i32
    %c0_i32_0 = arith.constant 0 : i32
    %c0_i32_1 = arith.constant 0 : i32
    return %c0_i32, %c0_i32_0 : i32, i32
  }
  func.func @transform_6(%arg0: i32) -> (i32, i32) {
    %c0_i32 = arith.constant 0 : i32
    %c0_i32_0 = arith.constant 0 : i32
    %c0_i32_1 = arith.constant 0 : i32
    return %c0_i32, %c0_i32_0 : i32, i32
  }
  func.func @transform_7(%arg0: i32) -> (i32, i32, i32) {
    %c0_i32 = arith.constant 0 : i32
    %c0_i32_0 = arith.constant 0 : i32
    %c0_i32_1 = arith.constant 0 : i32
    return %arg0, %c0_i32, %c0_i32_0 : i32, i32, i32
  }
}

</mosaic_0001>

<bundles_post_ra>
// kernel: tpu_custom_call.1
= control target key start
LH: loop header
LB: loop body
LE: loop exit
PB: predicated region body
PF: predicated region fallthrough
CT: control target
= control target key end

     0   :  { %v1009_v5 = vmov 0   ;;  %s1354_s0 = inlined_call_operand.vmem [shape: f32[128,128], index: 0, kind: input, shape index: {}]   ;;  %s1355_s1 = inlined_call_operand.vmem [shape: f32[128,128], index: 1, kind: input, shape index: {}]   ;;  %s1356_s2 = inlined_call_operand.vmem [shape: f32[128,1], index: 2, kind: input, shape index: {}]   ;;  %s1357_s3 = inlined_call_operand.vmem [shape: f32[128,128], index: 3, kind: input, shape index: {}]   ;;  %s1358_s4 = inlined_call_operand.vmem [shape: f32[128,1], index: 4, kind: input, shape index: {}]   ;;  %s1359_s5 = inlined_call_operand.vmem [shape: f32[128,1], index: 5, kind: input, shape index: {}]   ;;  %s1360_s6 = inlined_call_operand.<no memory space> [shape: f32[1,1], index: 6, kind: input, shape index: {}]   ;;  %s1361_s7 = inlined_call_operand.hbm [shape: f32[1,1,128], index: 7, kind: output, shape index: {}]  }
   0x1   :  { %v28_v0 = vld [vmem:[%s1354_s0] sm:$0xff]  ;;  %v29_v1 = vld [vmem:[%s1354_s0 + $0x8] sm:$0xff]  ;;  %v30_v2 = vld [vmem:[%s1354_s0 + $0x10] sm:$0xff]  ;;  %983 = vset.pattern.permute.xlu0 %v1009_v5  ;;  %984 = vset.pattern.permute.xlu1 %v1009_v5 }
   0x2   :  { %v917_v3 = vpack.c.bf16 %v29_v1, %v28_v0  ;;  %v31_v4 = vld [vmem:[%s1354_s0 + $0x18] sm:$0xff]  ;;  %v32_v7 = vld [vmem:[%s1354_s0 + $0x20] sm:$0xff]  ;;  %v33_v8 = vld [vmem:[%s1354_s0 + $0x28] sm:$0xff] }
   0x3   :  { %v921_v6 = vpack.c.bf16 %v31_v4, %v30_v2  ;;  %v60_v9 = vld [vmem:[%s1356_s2] sm:$0xff]  ;;  %v925_v10 = vpack.c.bf16 %v33_v8, %v32_v7  ;;  %v62_v11 = vld [vmem:[%s1356_s2 + $0x10] sm:$0xff]  ;;  %v35_v13 = vld [vmem:[%s1354_s0 + $0x38] sm:$0xff] }
   0x4   :  { %918 = vmatprep.subr.bf16.mxu0 %v917_v3  ;;  %78 = vperm.xlu0 %983, %v60_v9   ;;  %v34_v12 = vld [vmem:[%s1354_s0 + $0x30] sm:$0xff]  ;;  %v61_v14 = vld [vmem:[%s1356_s2 + $0x8] sm:$0xff]  ;;  %v63_v15 = vld [vmem:[%s1356_s2 + $0x18] sm:$0xff] }
   0x5   :  { %920 = vmatpush3.bf16.msra.mxu0 %v917_v3  ;;  %88 = vperm.xlu1 %984, %v62_v11   ;;  %v44_v16 = vld [vmem:[%s1355_s1] sm:$0xff]  ;;  %v929_v17 = vpack.c.bf16 %v35_v13, %v34_v12  ;;  %v37_v19 = vld [vmem:[%s1354_s0 + $0x48] sm:$0xff]  ;;  %v38_v23 = vld [vmem:[%s1354_s0 + $0x50] sm:$0xff] }
   0x6   :  { %922 = vmatprep.subr.bf16.mxu0 %v921_v6  ;;  %837 = vmatprep.mubr.f32.mxu0 %v44_v16  ;;  %v36_v18 = vld [vmem:[%s1354_s0 + $0x40] sm:$0xff]  ;;  %v65_v21 = vld [vmem:[%s1356_s2 + $0x28] sm:$0xff]  ;;  %v39_v24 = vld [vmem:[%s1354_s0 + $0x58] sm:$0xff] }
   0x7   :  { %v64_v20 = vld [vmem:[%s1356_s2 + $0x20] sm:$0xff]  ;;  %v933_v22 = vpack.c.bf16 %v37_v19, %v36_v18  ;;  %v66_v25 = vld [vmem:[%s1356_s2 + $0x30] sm:$0xff]  ;;  %v67_v26 = vld [vmem:[%s1356_s2 + $0x38] sm:$0xff]  ;;  %v937_v27 = vpack.c.bf16 %v39_v24, %v38_v23 }
   0x8   :  { %83 = vperm.xlu0 %983, %v61_v14   ;;  %v40_v28 = vld [vmem:[%s1354_s0 + $0x60] sm:$0xff]  ;;  %v41_v29 = vld [vmem:[%s1354_s0 + $0x68] sm:$0xff]  ;;  %v42_v33 = vld [vmem:[%s1354_s0 + $0x70] sm:$0xff] }
   0x9   :  { %924 = vmatpush3.bf16.msra.mxu0 %v921_v6  ;;  %93 = vperm.xlu1 %984, %v63_v15   ;;  %v68_v30 = vld [vmem:[%s1356_s2 + $0x40] sm:$0xff]  ;;  %v69_v31 = vld [vmem:[%s1356_s2 + $0x48] sm:$0xff]  ;;  %v941_v32 = vpack.c.bf16 %v41_v29, %v40_v28  ;;  %v43_v34 = vld [vmem:[%s1354_s0 + $0x78] sm:$0xff] }
   0xa   :  { %926 = vmatprep.subr.bf16.mxu0 %v925_v10  ;;  %v70_v35 = vld [vmem:[%s1356_s2 + $0x50] sm:$0xff]  ;;  %v71_v36 = vld [vmem:[%s1356_s2 + $0x58] sm:$0xff]  ;;  %v945_v37 = vpack.c.bf16 %v43_v34, %v42_v33  ;;  %v72_v38 = vld [vmem:[%s1356_s2 + $0x60] sm:$0xff] }
   0xc   :  { %98 = vperm.xlu0 %983, %v64_v20  }
   0xd   :  { %928 = vmatpush3.bf16.msra.mxu0 %v925_v10  ;;  %103 = vperm.xlu1 %984, %v65_v21  }
   0xe   :  { %930 = vmatprep.subr.bf16.mxu0 %v929_v17 }
  0x10   :  { %108 = vperm.xlu0 %983, %v66_v25  }
  0x11   :  { %932 = vmatpush3.bf16.msra.mxu0 %v929_v17  ;;  %113 = vperm.xlu1 %984, %v67_v26  }
  0x12   :  { %934 = vmatprep.subr.bf16.mxu0 %v933_v22 }
  0x14   :  { %118 = vperm.xlu0 %983, %v68_v30  }
  0x15   :  { %936 = vmatpush3.bf16.msra.mxu0 %v933_v22  ;;  %123 = vperm.xlu1 %984, %v69_v31  }
  0x16   :  { %938 = vmatprep.subr.bf16.mxu0 %v937_v27 }
  0x18   :  { %128 = vperm.xlu0 %983, %v70_v35  }
  0x19   :  { %940 = vmatpush3.bf16.msra.mxu0 %v937_v27  ;;  %133 = vperm.xlu1 %984, %v71_v36  }
  0x1a   :  { %942 = vmatprep.subr.bf16.mxu0 %v941_v32 }
  0x1b   :  { %13 = vsyncpa [#allocation4], 0  ;;  %v73_v39 = vld [vmem:[%s1356_s2 + $0x68] sm:$0xff]  ;;  %v74_v40 = vld [vmem:[%s1356_s2 + $0x70] sm:$0xff]  ;;  %s1010_s15 = smov [#allocation3]  }
  0x1c   :  { %138 = vperm.xlu0 %983, %v72_v38   ;;  %v75_v41 = vld [vmem:[%s1356_s2 + $0x78] sm:$0xff]  ;;  %v45_v42 = vld [vmem:[%s1355_s1 + $0x8] sm:$0xff]  ;;  %v46_v43 = vld [vmem:[%s1355_s1 + $0x10] sm:$0xff]  ;;  %s733_s16 = sshll.u32 %s1010_s15, 4  ;;  %s734_s16 = int_to_ptr.vmem [resolvable:$true] %s733_s16 }
  0x1d   :  { %944 = vmatpush3.bf16.msra.mxu0 %v941_v32  ;;  %143 = vperm.xlu1 %984, %v73_v39   ;;  %v333_v44 = vld [vmem:[%s1358_s4] sm:$0xff]  ;;  %v334_v45 = vld [vmem:[%s1358_s4 + $0x8] sm:$0xff]  ;;  %v47_v46 = vld [vmem:[%s1355_s1 + $0x18] sm:$0xff]  ;;  %s985_s17 = scalar_lea.vmem %s734_s16, 16  ;;  %s989_s18 = scalar_lea.vmem %s734_s16, 32 }
  0x1e   :  { %946 = vmatprep.subr.bf16.mxu0 %v945_v37  ;;  %v48_v47 = vld [vmem:[%s1355_s1 + $0x20] sm:$0xff]  ;;  %v335_v48 = vld [vmem:[%s1358_s4 + $0x10] sm:$0xff]  ;;  %v336_v49 = vld [vmem:[%s1358_s4 + $0x18] sm:$0xff]  ;;  %p986_p0 = scmp.ne.s32.totalorder %s734_s16, %s985_s17  ;;  %p990_p1 = scmp.lt.s32.totalorder %s734_s16, %s734_s16 }
  0x1f   :  { %v49_v50 = vld [vmem:[%s1355_s1 + $0x28] sm:$0xff]  ;;  %v50_v51 = vld [vmem:[%s1355_s1 + $0x30] sm:$0xff]  ;;  %v590_v52 = vld [vmem:[%s1359_s5] sm:$0xff]  ;;  %p991_p2 = scmp.lt.s32.totalorder %s989_s18, %s985_s17 }
  0x20   :  { %148 = vperm.xlu0 %983, %v74_v40   ;;  %v591_v53 = vld [vmem:[%s1359_s5 + $0x8] sm:$0xff]  ;;  %v51_v54 = vld [vmem:[%s1355_s1 + $0x38] sm:$0xff]  ;;  %v52_v55 = vld [vmem:[%s1355_s1 + $0x40] sm:$0xff] }
  0x21   :  { %948 = vmatpush3.bf16.msra.mxu0 %v945_v37  ;;  %153 = vperm.xlu1 %984, %v75_v41   ;;  %v337_v56 = vld [vmem:[%s1358_s4 + $0x20] sm:$0xff]  ;;  %v592_v57 = vld [vmem:[%s1359_s5 + $0x10] sm:$0xff]  ;;  %v53_v58 = vld [vmem:[%s1355_s1 + $0x48] sm:$0xff]  ;;  %p992_p3 = por %p991_p2, %p990_p1 }
  0x22   :  { %v54_v59 = vld [vmem:[%s1355_s1 + $0x50] sm:$0xff]  ;;  %v338_v60 = vld [vmem:[%s1358_s4 + $0x28] sm:$0xff]  ;;  %v593_v61 = vld [vmem:[%s1359_s5 + $0x18] sm:$0xff] }
  0x23   :  { %v55_v62 = vld [vmem:[%s1355_s1 + $0x58] sm:$0xff]  ;;  %v56_v63 = vld [vmem:[%s1355_s1 + $0x60] sm:$0xff]  ;;  %v339_v0 = vld [vmem:[%s1358_s4 + $0x30] sm:$0xff]  ;;  %p993_p4 = pnand %p992_p3, %p986_p0 }
  0x24   :  { %838 = vmatmul.mubr.f32.vlgmr.msra.gmra.mrb[0].mxu0 %v45_v42  ;;  %351 = vperm.xlu0 %983, %v333_v44   ;;  %v594_v1 = vld [vmem:[%s1359_s5 + $0x20] sm:$0xff]  ;;  %v57_v2 = vld [vmem:[%s1355_s1 + $0x68] sm:$0xff]  ;;  %v58_v3 = vld [vmem:[%s1355_s1 + $0x70] sm:$0xff] }
  0x25   :  { %840 = vmatprep.mubr.f32.mxu0 %v46_v43  ;;  %356 = vperm.xlu1 %984, %v334_v45   ;;  %v340_v4 = vld [vmem:[%s1358_s4 + $0x38] sm:$0xff]  ;;  %v595_v5 = vld [vmem:[%s1359_s5 + $0x28] sm:$0xff]  ;;  %v341_v7 = vld [vmem:[%s1358_s4 + $0x40] sm:$0xff] }
  0x26   :  { %v59_v6 = vld [vmem:[%s1355_s1 + $0x78] sm:$0xff]  ;;  %v596_v8 = vld [vmem:[%s1359_s5 + $0x30] sm:$0xff]  ;;  %v342_v9 = vld [vmem:[%s1358_s4 + $0x48] sm:$0xff] }
  0x27   :  { %v597_v10 = vld [vmem:[%s1359_s5 + $0x38] sm:$0xff]  ;;  %v343_v11 = vld [vmem:[%s1358_s4 + $0x50] sm:$0xff]  ;;  %v598_v12 = vld [vmem:[%s1359_s5 + $0x40] sm:$0xff] }
  0x28   :  { %841 = vmatmul.mubr.f32.gmra.mrb[2].mxu0 %v47_v46  ;;  %361 = vperm.xlu0 %983, %v335_v48   ;;  %v344_v13 = vld [vmem:[%s1358_s4 + $0x58] sm:$0xff]  ;;  %v599_v14 = vld [vmem:[%s1359_s5 + $0x48] sm:$0xff]  ;;  %v345_v15 = vld [vmem:[%s1358_s4 + $0x60] sm:$0xff] }
  0x29   :  { %843 = vmatprep.mubr.f32.mxu0 %v48_v47  ;;  %366 = vperm.xlu1 %984, %v336_v49   ;;  %v600_v16 = vld [vmem:[%s1359_s5 + $0x50] sm:$0xff]  ;;  %v346_v17 = vld [vmem:[%s1358_s4 + $0x68] sm:$0xff]  ;;  %v601_v18 = vld [vmem:[%s1359_s5 + $0x58] sm:$0xff] }
  0x2a   :  { %v347_v19 = vld [vmem:[%s1358_s4 + $0x70] sm:$0xff]  ;;  %v602_v20 = vld [vmem:[%s1359_s5 + $0x60] sm:$0xff]  ;;  %v348_v21 = vld [vmem:[%s1358_s4 + $0x78] sm:$0xff] }
  0x2b   :  { %v603_v22 = vld [vmem:[%s1359_s5 + $0x68] sm:$0xff]  ;;  %v604_v23 = vld [vmem:[%s1359_s5 + $0x70] sm:$0xff]  ;;  %v605_v24 = vld [vmem:[%s1359_s5 + $0x78] sm:$0xff] }
  0x2c   :  { %844 = vmatmul.mubr.f32.gmra.mrb[4].mxu0 %v49_v50  ;;  %608 = vperm.xlu0 %983, %v590_v52   ;;  %v317_v25 = vld [vmem:[%s1357_s3] sm:$0xff] }
  0x2d   :  { %846 = vmatprep.mubr.f32.mxu0 %v50_v51  ;;  %613 = vperm.xlu1 %984, %v591_v53  }
  0x2e   :  { %893 = vmatprep.mubr.f32.mxu1 %v317_v25 }
  0x30   :  { %847 = vmatmul.mubr.f32.gmra.mrb[6].mxu0 %v51_v54  ;;  %371 = vperm.xlu0 %983, %v337_v56  }
  0x31   :  { %849 = vmatprep.mubr.f32.mxu0 %v52_v55  ;;  %618 = vperm.xlu1 %984, %v592_v57  }
  0x34   :  { %850 = vmatmul.mubr.f32.gmra.mrb[8].mxu0 %v53_v58  ;;  %376 = vperm.xlu0 %983, %v338_v60  }
  0x35   :  { %852 = vmatprep.mubr.f32.mxu0 %v54_v59  ;;  %623 = vperm.xlu1 %984, %v593_v61  }
  0x38   :  { %853 = vmatmul.mubr.f32.gmra.mrb[10].mxu0 %v55_v62  ;;  %381 = vperm.xlu0 %983, %v339_v0  }
  0x39   :  { %855 = vmatprep.mubr.f32.mxu0 %v56_v63  ;;  %628 = vperm.xlu1 %984, %v594_v1  }
  0x3c   :  { %856 = vmatmul.mubr.f32.gmra.mrb[12].mxu0 %v57_v2  ;;  %386 = vperm.xlu0 %983, %v340_v4  }
  0x3d   :  { %858 = vmatprep.mubr.f32.mxu0 %v58_v3  ;;  %633 = vperm.xlu1 %984, %v595_v5  }
  0x40   :  { %859 = vmatmul.mubr.f32.gmra.mrb[14].mxu0 %v59_v6  ;;  %391 = vperm.xlu0 %983, %v341_v7  }
  0x41   :  { %638 = vperm.xlu1 %984, %v596_v8  }
  0x44   :  { %396 = vperm.xlu0 %983, %v342_v9  }
  0x45   :  { %643 = vperm.xlu1 %984, %v597_v10  }
  0x48   :  { %401 = vperm.xlu0 %983, %v343_v11  }
  0x49   :  { %648 = vperm.xlu1 %984, %v598_v12  }
  0x4c   :  { %406 = vperm.xlu0 %983, %v344_v13  }
  0x4d   :  { %653 = vperm.xlu1 %984, %v599_v14  }
  0x50   :  { %411 = vperm.xlu0 %983, %v345_v15  }
  0x51   :  { %658 = vperm.xlu1 %984, %v600_v16  }
  0x54   :  { %416 = vperm.xlu0 %983, %v346_v17  }
  0x55   :  { %663 = vperm.xlu1 %984, %v601_v18  }
  0x58   :  { %421 = vperm.xlu0 %983, %v347_v19  }
  0x59   :  { %668 = vperm.xlu1 %984, %v602_v20  }
  0x5c   :  { %426 = vperm.xlu0 %983, %v348_v21  }
  0x5d   :  { %673 = vperm.xlu1 %984, %v603_v22  }
  0x60   :  { %678 = vperm.xlu0 %983, %v604_v23  }
  0x61   :  { %683 = vperm.xlu1 %984, %v605_v24  }
  0x83   :  { %v79_v27 = vpop.permute.xlu0 %78 }
  0x84   :  { %v89_v26 = vpop.permute.xlu1 %88 }
  0x87   :  { %v84_v29 = vpop.permute.xlu0 %83 }
  0x88   :  { %v94_v28 = vpop.permute.xlu1 %93 }
  0x8b   :  { %v99_v31 = vpop.permute.xlu0 %98 }
  0x8c   :  { %v104_v30 = vpop.permute.xlu1 %103 }
  0x8f   :  { %v109_v40 = vpop.permute.xlu0 %108 }
  0x90   :  { %v114_v37 = vpop.permute.xlu1 %113 }
  0x93   :  { %v119_v53 = vpop.permute.xlu0 %118 }
  0x94   :  { %v124_v50 = vpop.permute.xlu1 %123 }
  0x97   :  { %v129_v1 = vpop.permute.xlu0 %128 }
  0x98   :  { %v134_v62 = vpop.permute.xlu1 %133 }
  0x9b   :  { %v139_v14 = vpop.permute.xlu0 %138 }
  0x9c   :  { %v144_v11 = vpop.permute.xlu1 %143 }
  0xa0   :  { %v154_v23 = vpop.permute.xlu1 %153 }
  0xf7   :  { %v839_v32 = vpop.f32.mrb[0].mxu0 }
  0xf8   :  { %v228_v33 = vadd.f32 %v839_v32, %v84_v29  ;;  %v222_v34 = vpop.f32.mrb[1].mxu0 }
  0xf9   :  { %v223_v35 = vadd.f32 %v222_v34, %v79_v27  ;;  %v318_v34 = vld [vmem:[%s1357_s3 + $0x8] sm:$0xff] }
  0xfa   :  { %v302_v36 = vmax.f32 %v228_v33, 0.0 }
  0xfb   :  { %v301_v38 = vmax.f32 %v223_v35, 0.0  ;;  %v842_v39 = vpop.f32.mrb[2].mxu0  ;;  %v319_v35 = vld [vmem:[%s1357_s3 + $0x10] sm:$0xff] }
  0xfc   :  { %v238_v41 = vadd.f32 %v842_v39, %v94_v28  ;;  %v232_v42 = vpop.f32.mrb[3].mxu0  ;;  %v323_v39 = vld [vmem:[%s1357_s3 + $0x30] sm:$0xff] }
  0xfd   :  { %v233_v43 = vadd.f32 %v232_v42, %v89_v26  ;;  %v949_v44 = vpack.c.bf16 %v302_v36, %v301_v38  ;;  %v149_v26 = vpop.permute.xlu0 %148  ;;  %v320_v36 = vld [vmem:[%s1357_s3 + $0x18] sm:$0xff]  ;;  %v322_v38 = vld [vmem:[%s1357_s3 + $0x28] sm:$0xff] }
  0xfe   :  { %v304_v45 = vmax.f32 %v238_v41, 0.0  ;;  %v325_v41 = vld [vmem:[%s1357_s3 + $0x40] sm:$0xff]  ;;  %v326_v42 = vld [vmem:[%s1357_s3 + $0x48] sm:$0xff] }
  0xff   :  { %v303_v46 = vmax.f32 %v233_v43, 0.0  ;;  %v845_v47 = vpop.f32.mrb[4].mxu0  ;;  %950 = vmatprep.subr.bf16.mxu1 %v949_v44  ;;  %v327_v43 = vld [vmem:[%s1357_s3 + $0x50] sm:$0xff] }
 0x100   :  { %v248_v48 = vadd.f32 %v845_v47, %v104_v30  ;;  %v242_v49 = vpop.f32.mrb[5].mxu0  ;;  %952 = vmatpush3.bf16.msra.mxu1 %v949_v44  ;;  %v328_v44 = vld [vmem:[%s1357_s3 + $0x58] sm:$0xff]  ;;  %v331_v47 = vld [vmem:[%s1357_s3 + $0x70] sm:$0xff] }
 0x101   :  { %v953_v51 = vpack.c.bf16 %v304_v45, %v303_v46  ;;  %v243_v52 = vadd.f32 %v242_v49, %v99_v31  ;;  %v329_v45 = vld [vmem:[%s1357_s3 + $0x60] sm:$0xff]  ;;  %v330_v46 = vld [vmem:[%s1357_s3 + $0x68] sm:$0xff]  ;;  %v352_v49 = vpop.permute.xlu0 %351 }
 0x102   :  { %v306_v54 = vmax.f32 %v248_v48, 0.0  ;;  %v332_v48 = vld [vmem:[%s1357_s3 + $0x78] sm:$0xff] }
 0x103   :  { %v305_v55 = vmax.f32 %v243_v52, 0.0  ;;  %v848_v56 = vpop.f32.mrb[6].mxu0  ;;  %954 = vmatprep.subr.bf16.mxu1 %v953_v51 }
 0x104   :  { %v258_v57 = vadd.f32 %v848_v56, %v114_v37  ;;  %v252_v58 = vpop.f32.mrb[7].mxu0  ;;  %956 = vmatpush3.bf16.msra.mxu1 %v953_v51  ;;  %v321_v37 = vld [vmem:[%s1357_s3 + $0x20] sm:$0xff] }
 0x105   :  { %v957_v59 = vpack.c.bf16 %v306_v54, %v305_v55  ;;  %v253_v60 = vadd.f32 %v252_v58, %v109_v40  ;;  %v324_v40 = vld [vmem:[%s1357_s3 + $0x38] sm:$0xff]  ;;  %v362_v51 = vpop.permute.xlu0 %361 }
 0x106   :  { %v308_v61 = vmax.f32 %v258_v57, 0.0 }
 0x107   :  { %v307_v63 = vmax.f32 %v253_v60, 0.0  ;;  %v851_v0 = vpop.f32.mrb[8].mxu0  ;;  %958 = vmatprep.subr.bf16.mxu1 %v957_v59 }
 0x108   :  { %v268_v2 = vadd.f32 %v851_v0, %v124_v50  ;;  %v262_v3 = vpop.f32.mrb[9].mxu0  ;;  %960 = vmatpush3.bf16.msra.mxu1 %v957_v59  ;;  %v357_v50 = vpop.permute.xlu1 %356 }
 0x109   :  { %v961_v4 = vpack.c.bf16 %v308_v61, %v307_v63  ;;  %v263_v5 = vadd.f32 %v262_v3, %v119_v53  ;;  %v609_v53 = vpop.permute.xlu0 %608 }
 0x10a   :  { %v310_v6 = vmax.f32 %v268_v2, 0.0 }
 0x10b   :  { %v309_v7 = vmax.f32 %v263_v5, 0.0  ;;  %v854_v8 = vpop.f32.mrb[10].mxu0  ;;  %962 = vmatprep.subr.bf16.mxu1 %v961_v4 }
 0x10c   :  { %v278_v9 = vadd.f32 %v854_v8, %v134_v62  ;;  %v272_v10 = vpop.f32.mrb[11].mxu0  ;;  %964 = vmatpush3.bf16.msra.mxu1 %v961_v4  ;;  %v367_v52 = vpop.permute.xlu1 %366 }
 0x10d   :  { %v965_v12 = vpack.c.bf16 %v310_v6, %v309_v7  ;;  %v273_v13 = vadd.f32 %v272_v10, %v129_v1  ;;  %v372_v55 = vpop.permute.xlu0 %371 }
 0x10e   :  { %v312_v15 = vmax.f32 %v278_v9, 0.0 }
 0x10f   :  { %v311_v16 = vmax.f32 %v273_v13, 0.0  ;;  %v857_v17 = vpop.f32.mrb[12].mxu0  ;;  %966 = vmatprep.subr.bf16.mxu1 %v965_v12 }
 0x110   :  { %v288_v18 = vadd.f32 %v857_v17, %v144_v11  ;;  %v282_v19 = vpop.f32.mrb[13].mxu0  ;;  %968 = vmatpush3.bf16.msra.mxu1 %v965_v12  ;;  %v614_v54 = vpop.permute.xlu1 %613 }
 0x111   :  { %v969_v20 = vpack.c.bf16 %v312_v15, %v311_v16  ;;  %v283_v21 = vadd.f32 %v282_v19, %v139_v14  ;;  %v377_v57 = vpop.permute.xlu0 %376 }
 0x112   :  { %v314_v22 = vmax.f32 %v288_v18, 0.0 }
 0x113   :  { %v313_v24 = vmax.f32 %v283_v21, 0.0  ;;  %v860_v25 = vpop.f32.mrb[14].mxu0  ;;  %970 = vmatprep.subr.bf16.mxu1 %v969_v20 }
 0x114   :  { %v298_v27 = vadd.f32 %v860_v25, %v154_v23  ;;  %v292_v28 = vpop.f32.mrb[15].mxu0  ;;  %972 = vmatpush3.bf16.msra.mxu1 %v969_v20  ;;  %v619_v56 = vpop.permute.xlu1 %618 }
 0x115   :  { %v973_v29 = vpack.c.bf16 %v314_v22, %v313_v24  ;;  %v293_v30 = vadd.f32 %v292_v28, %v149_v26  ;;  %v382_v59 = vpop.permute.xlu0 %381 }
 0x116   :  { %v316_v31 = vmax.f32 %v298_v27, 0.0 }
 0x117   :  { %v315_v32 = vmax.f32 %v293_v30, 0.0  ;;  %974 = vmatprep.subr.bf16.mxu1 %v973_v29 }
 0x118   :  { %976 = vmatpush3.bf16.msra.mxu1 %v973_v29  ;;  %v624_v58 = vpop.permute.xlu1 %623 }
 0x119   :  { %v977_v33 = vpack.c.bf16 %v316_v31, %v315_v32  ;;  %v387_v61 = vpop.permute.xlu0 %386 }
 0x11b   :  { %978 = vmatprep.subr.bf16.mxu1 %v977_v33 }
 0x11c   :  { %980 = vmatpush3.bf16.msra.mxu1 %v977_v33  ;;  %v629_v60 = vpop.permute.xlu1 %628 }
 0x11d   :  { %v392_v63 = vpop.permute.xlu0 %391 }
 0x11f   :  { %894 = vmatmul.mubr.f32.vlgmr.msra.gmra.mrb[0].mxu1 %v318_v34 }
 0x120   :  { %896 = vmatprep.mubr.f32.mxu1 %v319_v35  ;;  %v634_v62 = vpop.permute.xlu1 %633 }
 0x121   :  { %v397_v1 = vpop.permute.xlu0 %396 }
 0x123   :  { %897 = vmatmul.mubr.f32.gmra.mrb[2].mxu1 %v320_v36 }
 0x124   :  { %899 = vmatprep.mubr.f32.mxu1 %v321_v37  ;;  %v639_v0 = vpop.permute.xlu1 %638 }
 0x125   :  { %v402_v3 = vpop.permute.xlu0 %401 }
 0x127   :  { %900 = vmatmul.mubr.f32.gmra.mrb[4].mxu1 %v322_v38 }
 0x128   :  { %902 = vmatprep.mubr.f32.mxu1 %v323_v39  ;;  %v644_v2 = vpop.permute.xlu1 %643 }
 0x129   :  { %v407_v9 = vpop.permute.xlu0 %406 }
 0x12b   :  { %903 = vmatmul.mubr.f32.gmra.mrb[6].mxu1 %v324_v40 }
 0x12c   :  { %905 = vmatprep.mubr.f32.mxu1 %v325_v41  ;;  %v649_v4 = vpop.permute.xlu1 %648 }
 0x12d   :  { %v412_v23 = vpop.permute.xlu0 %411 }
 0x12f   :  { %906 = vmatmul.mubr.f32.gmra.mrb[8].mxu1 %v326_v42 }
 0x130   :  { %908 = vmatprep.mubr.f32.mxu1 %v327_v43  ;;  %v654_v13 = vpop.permute.xlu1 %653 }
 0x131   :  { %v417_v39 = vpop.permute.xlu0 %416 }
 0x133   :  { %909 = vmatmul.mubr.f32.gmra.mrb[10].mxu1 %v328_v44 }
 0x134   :  { %911 = vmatprep.mubr.f32.mxu1 %v329_v45  ;;  %v659_v28 = vpop.permute.xlu1 %658 }
 0x137   :  { %912 = vmatmul.mubr.f32.gmra.mrb[12].mxu1 %v330_v46 }
 0x138   :  { %914 = vmatprep.mubr.f32.mxu1 %v331_v47  ;;  %v664_v45 = vpop.permute.xlu1 %663 }
 0x13b   :  { %915 = vmatmul.mubr.f32.gmra.mrb[14].mxu1 %v332_v48 }
 0x1f2   :  { %v895_v5 = vpop.f32.mrb[0].mxu1 }
 0x1f3   :  { %v501_v6 = vadd.f32 %v895_v5, %v357_v50  ;;  %v495_v7 = vpop.f32.mrb[1].mxu1 }
 0x1f4   :  { %v496_v8 = vadd.f32 %v495_v7, %v352_v49 }
 0x1f5   :  { %v575_v10 = vmax.f32 %v501_v6, 0.0 }
 0x1f6   :  { %v574_v11 = vmax.f32 %v496_v8, 0.0  ;;  %v898_v12 = vpop.f32.mrb[2].mxu1 }
 0x1f7   :  { %v687_v14 = vmul.f32 %v614_v54, %v575_v10  ;;  %v511_v15 = vadd.f32 %v898_v12, %v367_v52  ;;  %v505_v16 = vpop.f32.mrb[3].mxu1 }
 0x1f8   :  { %v686_v17 = vmul.f32 %v609_v53, %v574_v11  ;;  %v506_v18 = vadd.f32 %v505_v16, %v362_v51 }
 0x1f9   :  { %v577_v20 = vmax.f32 %v511_v15, 0.0 }
 0x1fa   :  { %v702_v19 = vadd.f32 %v687_v14, %v686_v17  ;;  %v576_v21 = vmax.f32 %v506_v18, 0.0  ;;  %v901_v22 = vpop.f32.mrb[4].mxu1 }
 0x1fb   :  { %v521_v24 = vadd.f32 %v901_v22, %v377_v57  ;;  %v515_v25 = vpop.f32.mrb[5].mxu1  ;;  %v689_v29 = vmul.f32 %v624_v58, %v577_v20 }
 0x1fc   :  { %v688_v26 = vmul.f32 %v619_v56, %v576_v21  ;;  %v516_v27 = vadd.f32 %v515_v25, %v372_v55  ;;  %v422_v56 = vpop.permute.xlu0 %421 }
 0x1fd   :  { %v579_v31 = vmax.f32 %v521_v24, 0.0 }
 0x1fe   :  { %v703_v30 = vadd.f32 %v702_v19, %v688_v26  ;;  %v578_v32 = vmax.f32 %v516_v27, 0.0  ;;  %v904_v33 = vpop.f32.mrb[6].mxu1 }
 0x1ff   :  { %v531_v34 = vadd.f32 %v904_v33, %v387_v61  ;;  %v525_v35 = vpop.f32.mrb[7].mxu1  ;;  %v691_v40 = vmul.f32 %v634_v62, %v579_v31  ;;  %v669_v62 = vpop.permute.xlu1 %668 }
 0x200   :  { %v690_v36 = vmul.f32 %v629_v60, %v578_v32  ;;  %v704_v37 = vadd.f32 %v703_v30, %v689_v29  ;;  %v526_v38 = vadd.f32 %v525_v35, %v382_v59  ;;  %v427_v12 = vpop.permute.xlu0 %426 }
 0x201   :  { %v581_v42 = vmax.f32 %v531_v34, 0.0 }
 0x202   :  { %v705_v41 = vadd.f32 %v704_v37, %v690_v36  ;;  %v580_v43 = vmax.f32 %v526_v38, 0.0  ;;  %v907_v44 = vpop.f32.mrb[8].mxu1  ;;  %v724_v37 = vstv %s1360_s6 }
 0x203   :  { %v541_v46 = vadd.f32 %v907_v44, %v397_v1  ;;  %v535_v47 = vpop.f32.mrb[9].mxu1  ;;  %v693_v51 = vmul.f32 %v644_v2, %v581_v42 }
 0x204   :  { %v692_v48 = vmul.f32 %v639_v0, %v580_v43  ;;  %v706_v49 = vadd.f32 %v705_v41, %v691_v40  ;;  %v536_v50 = vadd.f32 %v535_v47, %v392_v63  ;;  %v679_v26 = vpop.permute.xlu0 %678 }
 0x205   :  { %v583_v53 = vmax.f32 %v541_v46, 0.0 }
 0x206   :  { %v707_v52 = vadd.f32 %v706_v49, %v692_v48  ;;  %v582_v54 = vmax.f32 %v536_v50, 0.0  ;;  %v910_v55 = vpop.f32.mrb[10].mxu1 }
 0x207   :  { %v551_v57 = vadd.f32 %v910_v55, %v407_v9  ;;  %v545_v58 = vpop.f32.mrb[11].mxu1  ;;  %v695_v5 = vmul.f32 %v654_v13, %v583_v53 }
 0x208   :  { %v694_v59 = vmul.f32 %v649_v4, %v582_v54  ;;  %v708_v60 = vadd.f32 %v707_v52, %v693_v51  ;;  %v546_v61 = vadd.f32 %v545_v58, %v402_v3  ;;  %v674_v4 = vpop.permute.xlu1 %673 }
 0x209   :  { %v585_v7 = vmax.f32 %v551_v57, 0.0 }
 0x20a   :  { %v709_v6 = vadd.f32 %v708_v60, %v694_v59  ;;  %v584_v1 = vmax.f32 %v546_v61, 0.0  ;;  %v913_v8 = vpop.f32.mrb[12].mxu1 }
 0x20b   :  { %v561_v0 = vadd.f32 %v913_v8, %v417_v39  ;;  %v555_v10 = vpop.f32.mrb[13].mxu1  ;;  %v697_v14 = vmul.f32 %v664_v45, %v585_v7 }
 0x20c   :  { %v696_v63 = vmul.f32 %v659_v28, %v584_v1  ;;  %v710_v2 = vadd.f32 %v709_v6, %v695_v5  ;;  %v556_v11 = vadd.f32 %v555_v10, %v412_v23  ;;  %v684_v23 = vpop.permute.xlu1 %683 }
 0x20d   :  { %v587_v16 = vmax.f32 %v561_v0, 0.0 }
 0x20e   :  { %v711_v15 = vadd.f32 %v710_v2, %v696_v63  ;;  %v586_v9 = vmax.f32 %v556_v11, 0.0  ;;  %v916_v17 = vpop.f32.mrb[14].mxu1 }
 0x20f   :  { %v571_v18 = vadd.f32 %v916_v17, %v427_v12  ;;  %v565_v3 = vpop.f32.mrb[15].mxu1  ;;  %v699_v21 = vmul.f32 %v674_v4, %v587_v16 }
 0x210   :  { %v698_v19 = vmul.f32 %v669_v62, %v586_v9  ;;  %v712_v13 = vadd.f32 %v711_v15, %v697_v14  ;;  %v566_v20 = vadd.f32 %v565_v3, %v422_v56 }
 0x211   :  { %v589_v24 = vmax.f32 %v571_v18, 0.0 }
 0x212   :  { %v713_v22 = vadd.f32 %v712_v13, %v698_v19  ;;  %v588_v25 = vmax.f32 %v566_v20, 0.0 }
 0x213   :  { %v701_v29 = vmul.f32 %v684_v23, %v589_v24 }
 0x214   :  { %v700_v27 = vmul.f32 %v679_v26, %v588_v25  ;;  %v714_v28 = vadd.f32 %v713_v22, %v699_v21 }
 0x216   :  { %v715_v30 = vadd.f32 %v714_v28, %v700_v27 }
 0x218   :  { %v716_v31 = vadd.f32 %v715_v30, %v701_v29 }
 0x21a   :  { %v717_v32 = vrot.slane %v716_v31, 4 }
 0x21c   :  { %v718_v33 = vadd.f32 %v717_v32, %v716_v31 }
 0x21e   :  { %v719_v34 = vrot.slane %v718_v33, 2 }
 0x220   :  { %v720_v35 = vadd.f32 %v719_v34, %v718_v33 }
 0x222   :  { %v721_v36 = vrot.slane %v720_v35, 1 }
 0x224   :  { %v722_v38 = vadd.f32 %v721_v36, %v720_v35 }
 0x226   :  { %v725_v39 = vadd.f32 %v724_v37, %v722_v38 }
 0x228   :  { %726 = vst [vmem:[#allocation3] sm:$0x1] %v725_v39 }
 0x229   :  { %996 = shalt.err (!%p993_p4)
}
 0x22a   :  { %s997_s21 = scalar_lea.hbm %s1361_s7, 16 }
 0x22b   :  { %p998_p5 = scmp.ne.s32.totalorder %s1361_s7, %s997_s21  ;;  %p1001_p6 = scmp.lt.u32.totalorder %s997_s21, %s1361_s7 }
 0x22d   :  { %p1003_p7 = pnand %p1001_p6, %p998_p5 }
 0x22f   :  { %1006 = shalt.err (!%p1003_p7)
}
 0x230   :  { %736 = dma.vmem_to_hbm [thread:$0]  %s734_s16, 16, %s1361_s7, [#allocation4]  }
 0x231   :  { %1007 = dma.done.wait [#allocation4], 16  }
 0x232   :  { %1008 = vsyncadd [#allocation4], 4294967280 }
 0x233   :  { %740 = vsyncpa [#allocation4], 1 }

</bundles_post_ra>
